<compile_context>
chip_gen: v6e
topology: v6e:2x2x1
jax: 0.10.0
libtpu: 0.0.40
codegen_flags: <defaults>
</compile_context>

<pallas_src>
import numpy as np
import jax
import jax.numpy as jnp
from jax.experimental import pallas as pl
from jax.experimental.pallas import tpu as pltpu


def _bitonic_stage_params(B):
    """Static (j, k) compare-exchange schedule for an ascending bitonic sort."""
    stages = []
    k = 2
    while k <= B:
        j = k // 2
        while j >= 1:
            stages.append((j, k))
            j //= 2
        k *= 2
    return stages


def _bitonic_stage_masks(B, K):
    """Per-stage (shift, is_lower, keep_min) masks, built ONCE per kernel body.

    They depend only on (B, j, k), so they are effectively trace-time constants
    shared by all 2*PP sorts of a grid step.
    """
    iota = jax.lax.broadcasted_iota(jnp.int32, (B, K), 0)
    consts = []
    for j, k in _bitonic_stage_params(B):
        is_lower = (iota & j) == 0                     # bit j of row index is 0
        m = iota & (j | k)
        keep_min = jnp.logical_or(m == 0, m == (j + k))  # bit j == bit k
        consts.append((j, is_lower, keep_min))
    return consts


def _bitonic_sort_sublanes(x, stage_masks, B):
    """Sort a (B, K) array ascending along axis 0 (sublanes). B: power of two.

    Every stage: two XLU sublane rotations, one partner select, one min/max
    pair and one keep-min select, all on whole (B, K) tiles.
    """
    for j, is_lower, keep_min in stage_masks:
        up = pltpu.roll(x, shift=B - j, axis=0)    # up[i]   = x[(i + j) % B]
        down = pltpu.roll(x, shift=j, axis=0)      # down[i] = x[(i - j) % B]
        partner = jnp.where(is_lower, up, down)    # partner[i] = x[i ^ j]
        lo = jnp.minimum(x, partner)
        hi = jnp.maximum(x, partner)
        x = jnp.where(keep_min, lo, hi)
    return x


def _make_swd_group_kernel(pairs_per_step, pp_pad):
    def kernel(pi_ref, pj_ref, agents_ref, proj_ref, o_ref):
        # pi_ref/pj_ref: scalar-prefetched pair indices (SMEM).
        # agents_ref:    resident (N, B, D) f32 stacked hidden states (VMEM).
        # proj_ref:      (PP, D, K) bf16 per-pair projection block.
        # o_ref:         (PP_pad, K) f32 lane-dense per-pair per-lane partials.
        g = pl.program_id(0)
        B = agents_ref.shape[1]
        K = proj_ref.shape[2]
        inv = 1.0 / (B * K)

        stage_masks = _bitonic_stage_masks(B, K)   # hoisted: shared by all sorts

        rows = []
        for p in range(pairs_per_step):            # unrolled at trace time
            idx = g * pairs_per_step + p
            i = pi_ref[idx]
            j = pj_ref[idx]
            x = agents_ref[i]                      # (B, D) f32
            y = agents_ref[j]                      # (B, D) f32
            # One fused bf16 MXU matmul for both agents of the pair.
            xy = jnp.concatenate([x, y], axis=0).astype(jnp.bfloat16)   # (2B, D)
            pxy = jnp.dot(xy, proj_ref[p], preferred_element_type=jnp.float32)
            # Per-projection (per-column) sort along the batch axis.
            sx = _bitonic_sort_sublanes(pxy[:B], stage_masks, B)
            sy = _bitonic_sort_sublanes(pxy[B:], stage_masks, B)
            d = sx - sy
            # Per-lane partial: sum_B d^2 / (B*K); lane + pair sums done in JAX.
            rows.append(jnp.sum(d * d, axis=0, keepdims=True) * inv)    # (1, K)
        if pp_pad > pairs_per_step:
            rows.append(jnp.zeros((pp_pad - pairs_per_step, K), jnp.float32))
        # Single unmasked full-tile store.
        o_ref[...] = jnp.concatenate(rows, axis=0)

    return kernel


def _make_projections(key, num_pairs, dim, num_projections):
    """One fresh column-normalized projection per pair (mirrors per-call randn)."""
    keys = jax.random.split(key, num_pairs)
    proj = jax.vmap(
        lambda kk: jax.random.normal(kk, (dim, num_projections), dtype=jnp.float32)
    )(keys)                                                  # (num_pairs, D, K)
    norm = jnp.sqrt(jnp.sum(proj * proj, axis=1, keepdims=True))
    return proj / jnp.maximum(norm, 1e-12)


def _pairs_per_step(num_pairs, batch):
    # Aim at ~256 MXU LHS rows (2*B*PP) but keep >= 2 grid steps so the
    # pair-group axis can shard across the 2 TensorCores on v7x.
    target_rows = 256
    pp = max(1, target_rows // max(1, 2 * batch))
    if num_pairs >= 2:
        pp = min(pp, -(-num_pairs // 2))
    return max(1, min(pp, num_pairs))


def sliced_wasserstein_hidden_state_regularizer(
    agent_hidden_states, num_projections=128, key=None
):
    """Average pairwise squared sliced-W2 distance among agent hidden states."""
    n = len(agent_hidden_states)
    if n == 0:
        return jnp.float32(0.0)
    out_dtype = agent_hidden_states[0].dtype
    if n < 2:
        return jnp.zeros((), dtype=out_dtype)

    B, D = agent_hidden_states[0].shape
    if B == 0:
        return jnp.zeros((), dtype=out_dtype)
    # TODO(synk): non power-of-two batch sizes would need sentinel-padded rows
    # in the bitonic network; the demo uses B = 8.
    assert B & (B - 1) == 0, "batch size must be a power of two for the bitonic sort"

    if key is None:
        key = jax.random.PRNGKey(0)

    K = num_projections
    stacked = jnp.stack(agent_hidden_states).astype(jnp.float32)   # (N, B, D)

    pairs = [(a, b) for a in range(n) for b in range(a + 1, n)]
    num_pairs = len(pairs)

    pp = _pairs_per_step(num_pairs, B)
    num_steps = -(-num_pairs // pp)
    num_pairs_padded = num_steps * pp
    pp_pad = max(8, ((pp + 7) // 8) * 8)            # unmasked (>=8, K) out tiles

    pi_np = np.zeros((num_pairs_padded,), dtype=np.int32)
    pj_np = np.zeros((num_pairs_padded,), dtype=np.int32)
    pi_np[:num_pairs] = [p[0] for p in pairs]
    pj_np[:num_pairs] = [p[1] for p in pairs]       # padded pairs are (0, 0)
    pi = jnp.asarray(pi_np)
    pj = jnp.asarray(pj_np)

    projs = _make_projections(key, num_pairs, D, K)                 # f32
    projs_bf16 = jnp.pad(
        projs.astype(jnp.bfloat16),
        ((0, num_pairs_padded - num_pairs), (0, 0), (0, 0)),
    )                                                               # (padded, D, K)

    grid_spec = pltpu.PrefetchScalarGridSpec(
        num_scalar_prefetch=2,
        grid=(num_steps,),
        in_specs=[
            # Whole stacked agent tensor resident in VMEM (constant block
            # index -> DMA'd once, not re-fetched per pair-group).
            pl.BlockSpec((n, B, D), lambda g, pi, pj: (0, 0, 0)),
            # Per-group projection block (bf16 stream).
            pl.BlockSpec((pp, D, K), lambda g, pi, pj: (g, 0, 0)),
        ],
        out_specs=pl.BlockSpec((pp_pad, K), lambda g, pi, pj: (g, 0)),
    )

    partials = pl.pallas_call(
        _make_swd_group_kernel(pp, pp_pad),
        out_shape=jax.ShapeDtypeStruct((num_steps * pp_pad, K), jnp.float32),
        grid_spec=grid_spec,
        compiler_params=pltpu.CompilerParams(
            dimension_semantics=("parallel",)
        ),
    )(pi, pj, stacked, projs_bf16)

    per_pair = (
        partials.reshape(num_steps, pp_pad, K)[:, :pp, :].reshape(num_steps * pp, K)
    )
    result = jnp.sum(per_pair[:num_pairs]) / num_pairs
    return result.astype(out_dtype)


def _reference(stacked_f32, projs_f32, pairs):
    """Pure-JAX reference with the same projections and the same bf16 matmul
    operand cast / f32 accumulation as the kernel."""
    B = stacked_f32.shape[1]
    total = 0.0
    for idx, (i, j) in enumerate(pairs):
        P = projs_f32[idx].astype(jnp.bfloat16)
        px = jnp.dot(stacked_f32[i].astype(jnp.bfloat16), P,
                     preferred_element_type=jnp.float32)
        py = jnp.dot(stacked_f32[j].astype(jnp.bfloat16), P,
                     preferred_element_type=jnp.float32)
        sx = jnp.sort(px, axis=0)
        sy = jnp.sort(py, axis=0)
        total = total + jnp.mean(jnp.sum((sx - sy) ** 2, axis=0) / B)
    return total / len(pairs)


if __name__ == "__main__":
    num_agents = 3
    batch = 8
    dim_features = 32
    num_projections = 128

    root = jax.random.PRNGKey(0)
    keys = jax.random.split(root, num_agents + 1)
    proj_key = keys[0]
    agent_hidden_states = [
        jax.random.normal(keys[a + 1], (batch, dim_features), dtype=jnp.float32)
        + 0.5 * a  # shift agents apart so the distance is non-trivial
        for a in range(num_agents)
    ]

    result = sliced_wasserstein_hidden_state_regularizer(
        agent_hidden_states, num_projections=num_projections, key=proj_key
    )
    result = jax.block_until_ready(result)

    # Identical projections for the pure-JAX reference check.
    pairs = [(i, j) for i in range(num_agents) for j in range(i + 1, num_agents)]
    stacked = jnp.stack(agent_hidden_states).astype(jnp.float32)
    projs = _make_projections(proj_key, len(pairs), dim_features, num_projections)
    ref = jax.block_until_ready(_reference(stacked, projs, pairs))

    assert jnp.allclose(result, ref, rtol=1e-3, atol=1e-5), (result, ref)
    print("KERNEL_OK")
</pallas_src>

<mosaic_0001>
module attributes {stable_mosaic.version = 11 : i64} {
  func.func @kernel(%arg0: i32, %arg1: memref<4xi32, #tpu.memory_space<smem>>, %arg2: memref<4xi32, #tpu.memory_space<smem>>, %arg3: memref<3x8x32xf32, #tpu.memory_space<vmem>>, %arg4: memref<2x32x128xbf16, #tpu.memory_space<vmem>>, %arg5: memref<8x128xf32, #tpu.memory_space<vmem>>) attributes {dimension_semantics = [#tpu.dimension_semantics<parallel>], iteration_bounds = array<i64: 2>, scalar_prefetch = 2 : i64, scratch_operands = 0 : i64, tpu.core_type = #tpu.core_type<tc>, window_params = [{pipeline_mode = #tpu.pipeline_mode<synchronous>, transform_indices = @transform_0, window_bounds = array<i64: 3, 8, 32>}, {transform_indices = @transform_1, window_bounds = array<i64: 2, 32, 128>}, {transform_indices = @transform_2, window_bounds = array<i64: 8, 128>}]} {
    %0 = tpu.iota {dimensions = array<i32: 0>} : vector<8x128xi32>
    %c1_i32 = arith.constant 1 : i32
    %1 = vector.broadcast %c1_i32 : i32 to vector<8x128xi32>
    %2 = arith.andi %0, %1 : vector<8x128xi32>
    %c0_i32 = arith.constant 0 : i32
    %3 = vector.broadcast %c0_i32 : i32 to vector<8x128xi32>
    %4 = arith.cmpi eq, %2, %3 : vector<8x128xi32>
    %c3_i32 = arith.constant 3 : i32
    %5 = vector.broadcast %c3_i32 : i32 to vector<8x128xi32>
    %6 = arith.andi %0, %5 : vector<8x128xi32>
    %c0_i32_0 = arith.constant 0 : i32
    %7 = vector.broadcast %c0_i32_0 : i32 to vector<8x128xi32>
    %8 = arith.cmpi eq, %6, %7 : vector<8x128xi32>
    %c3_i32_1 = arith.constant 3 : i32
    %9 = vector.broadcast %c3_i32_1 : i32 to vector<8x128xi32>
    %10 = arith.cmpi eq, %6, %9 : vector<8x128xi32>
    %11 = arith.ori %8, %10 : vector<8x128xi1>
    %c2_i32 = arith.constant 2 : i32
    %12 = vector.broadcast %c2_i32 : i32 to vector<8x128xi32>
    %13 = arith.andi %0, %12 : vector<8x128xi32>
    %c0_i32_2 = arith.constant 0 : i32
    %14 = vector.broadcast %c0_i32_2 : i32 to vector<8x128xi32>
    %15 = arith.cmpi eq, %13, %14 : vector<8x128xi32>
    %c6_i32 = arith.constant 6 : i32
    %16 = vector.broadcast %c6_i32 : i32 to vector<8x128xi32>
    %17 = arith.andi %0, %16 : vector<8x128xi32>
    %c0_i32_3 = arith.constant 0 : i32
    %18 = vector.broadcast %c0_i32_3 : i32 to vector<8x128xi32>
    %19 = arith.cmpi eq, %17, %18 : vector<8x128xi32>
    %c6_i32_4 = arith.constant 6 : i32
    %20 = vector.broadcast %c6_i32_4 : i32 to vector<8x128xi32>
    %21 = arith.cmpi eq, %17, %20 : vector<8x128xi32>
    %22 = arith.ori %19, %21 : vector<8x128xi1>
    %c1_i32_5 = arith.constant 1 : i32
    %23 = vector.broadcast %c1_i32_5 : i32 to vector<8x128xi32>
    %24 = arith.andi %0, %23 : vector<8x128xi32>
    %c0_i32_6 = arith.constant 0 : i32
    %25 = vector.broadcast %c0_i32_6 : i32 to vector<8x128xi32>
    %26 = arith.cmpi eq, %24, %25 : vector<8x128xi32>
    %c5_i32 = arith.constant 5 : i32
    %27 = vector.broadcast %c5_i32 : i32 to vector<8x128xi32>
    %28 = arith.andi %0, %27 : vector<8x128xi32>
    %c0_i32_7 = arith.constant 0 : i32
    %29 = vector.broadcast %c0_i32_7 : i32 to vector<8x128xi32>
    %30 = arith.cmpi eq, %28, %29 : vector<8x128xi32>
    %c5_i32_8 = arith.constant 5 : i32
    %31 = vector.broadcast %c5_i32_8 : i32 to vector<8x128xi32>
    %32 = arith.cmpi eq, %28, %31 : vector<8x128xi32>
    %33 = arith.ori %30, %32 : vector<8x128xi1>
    %c4_i32 = arith.constant 4 : i32
    %34 = vector.broadcast %c4_i32 : i32 to vector<8x128xi32>
    %35 = arith.andi %0, %34 : vector<8x128xi32>
    %c0_i32_9 = arith.constant 0 : i32
    %36 = vector.broadcast %c0_i32_9 : i32 to vector<8x128xi32>
    %37 = arith.cmpi eq, %35, %36 : vector<8x128xi32>
    %c12_i32 = arith.constant 12 : i32
    %38 = vector.broadcast %c12_i32 : i32 to vector<8x128xi32>
    %39 = arith.andi %0, %38 : vector<8x128xi32>
    %c0_i32_10 = arith.constant 0 : i32
    %40 = vector.broadcast %c0_i32_10 : i32 to vector<8x128xi32>
    %41 = arith.cmpi eq, %39, %40 : vector<8x128xi32>
    %c12_i32_11 = arith.constant 12 : i32
    %42 = vector.broadcast %c12_i32_11 : i32 to vector<8x128xi32>
    %43 = arith.cmpi eq, %39, %42 : vector<8x128xi32>
    %44 = arith.ori %41, %43 : vector<8x128xi1>
    %c2_i32_12 = arith.constant 2 : i32
    %45 = vector.broadcast %c2_i32_12 : i32 to vector<8x128xi32>
    %46 = arith.andi %0, %45 : vector<8x128xi32>
    %c0_i32_13 = arith.constant 0 : i32
    %47 = vector.broadcast %c0_i32_13 : i32 to vector<8x128xi32>
    %48 = arith.cmpi eq, %46, %47 : vector<8x128xi32>
    %c10_i32 = arith.constant 10 : i32
    %49 = vector.broadcast %c10_i32 : i32 to vector<8x128xi32>
    %50 = arith.andi %0, %49 : vector<8x128xi32>
    %c0_i32_14 = arith.constant 0 : i32
    %51 = vector.broadcast %c0_i32_14 : i32 to vector<8x128xi32>
    %52 = arith.cmpi eq, %50, %51 : vector<8x128xi32>
    %c10_i32_15 = arith.constant 10 : i32
    %53 = vector.broadcast %c10_i32_15 : i32 to vector<8x128xi32>
    %54 = arith.cmpi eq, %50, %53 : vector<8x128xi32>
    %55 = arith.ori %52, %54 : vector<8x128xi1>
    %c1_i32_16 = arith.constant 1 : i32
    %56 = vector.broadcast %c1_i32_16 : i32 to vector<8x128xi32>
    %57 = arith.andi %0, %56 : vector<8x128xi32>
    %c0_i32_17 = arith.constant 0 : i32
    %58 = vector.broadcast %c0_i32_17 : i32 to vector<8x128xi32>
    %59 = arith.cmpi eq, %57, %58 : vector<8x128xi32>
    %c9_i32 = arith.constant 9 : i32
    %60 = vector.broadcast %c9_i32 : i32 to vector<8x128xi32>
    %61 = arith.andi %0, %60 : vector<8x128xi32>
    %c0_i32_18 = arith.constant 0 : i32
    %62 = vector.broadcast %c0_i32_18 : i32 to vector<8x128xi32>
    %63 = arith.cmpi eq, %61, %62 : vector<8x128xi32>
    %c9_i32_19 = arith.constant 9 : i32
    %64 = vector.broadcast %c9_i32_19 : i32 to vector<8x128xi32>
    %65 = arith.cmpi eq, %61, %64 : vector<8x128xi32>
    %66 = arith.ori %63, %65 : vector<8x128xi1>
    %c2_i32_20 = arith.constant 2 : i32
    %67 = arith.muli %arg0, %c2_i32_20 : i32
    %c0_i32_21 = arith.constant 0 : i32
    %68 = arith.addi %67, %c0_i32_21 : i32
    %69 = arith.index_cast %68 : i32 to index
    %70 = memref.load %arg1[%69] : memref<4xi32, #tpu.memory_space<smem>>
    %71 = arith.index_cast %68 : i32 to index
    %72 = memref.load %arg2[%71] : memref<4xi32, #tpu.memory_space<smem>>
    %73 = arith.index_cast %70 : i32 to index
    %c0 = arith.constant 0 : index
    %c0_22 = arith.constant 0 : index
    %74 = vector.load %arg3[%73, %c0, %c0_22] : memref<3x8x32xf32, #tpu.memory_space<vmem>>, vector<1x8x32xf32>
    %75 = vector.shape_cast %74 : vector<1x8x32xf32> to vector<8x32xf32>
    %76 = arith.index_cast %72 : i32 to index
    %c0_23 = arith.constant 0 : index
    %c0_24 = arith.constant 0 : index
    %77 = vector.load %arg3[%76, %c0_23, %c0_24] : memref<3x8x32xf32, #tpu.memory_space<vmem>>, vector<1x8x32xf32>
    %78 = vector.shape_cast %77 : vector<1x8x32xf32> to vector<8x32xf32>
    %79 = tpu.concatenate %75, %78 in 0 : vector<8x32xf32>, vector<8x32xf32> -> vector<16x32xf32>
    %80 = arith.truncf %79 : vector<16x32xf32> to vector<16x32xbf16>
    %c0_25 = arith.constant 0 : index
    %c0_26 = arith.constant 0 : index
    %c0_27 = arith.constant 0 : index
    %81 = vector.load %arg4[%c0_25, %c0_26, %c0_27] : memref<2x32x128xbf16, #tpu.memory_space<vmem>>, vector<1x32x128xbf16>
    %82 = vector.shape_cast %81 : vector<1x32x128xbf16> to vector<32x128xbf16>
    %cst = arith.constant dense<0.000000e+00> : vector<16x128xf32>
    %83 = tpu.matmul %80, %82, %cst {dimension_numbers = #tpu.dot_dimension_numbers<[1], [0], [0], [1], [0, 0, 1, 1], [], []>} : vector<16x32xbf16>, vector<32x128xbf16>, vector<16x128xf32> -> vector<16x128xf32>
    %84 = vector.extract_strided_slice %83 {offsets = [0, 0], sizes = [8, 128], strides = [1, 1]} : vector<16x128xf32> to vector<8x128xf32>
    %c7_i32 = arith.constant 7 : i32
    %85 = tpu.dynamic_rotate %84 by %c7_i32 dim 0 : vector<8x128xf32>, i32 -> vector<8x128xf32>
    %c1_i32_28 = arith.constant 1 : i32
    %86 = tpu.dynamic_rotate %84 by %c1_i32_28 dim 0 : vector<8x128xf32>, i32 -> vector<8x128xf32>
    %87 = arith.select %4, %85, %86 : vector<8x128xi1>, vector<8x128xf32>
    %88 = arith.minimumf %84, %87 : vector<8x128xf32>
    %89 = arith.maximumf %84, %87 : vector<8x128xf32>
    %90 = arith.select %11, %88, %89 : vector<8x128xi1>, vector<8x128xf32>
    %c6_i32_29 = arith.constant 6 : i32
    %91 = tpu.dynamic_rotate %90 by %c6_i32_29 dim 0 : vector<8x128xf32>, i32 -> vector<8x128xf32>
    %c2_i32_30 = arith.constant 2 : i32
    %92 = tpu.dynamic_rotate %90 by %c2_i32_30 dim 0 : vector<8x128xf32>, i32 -> vector<8x128xf32>
    %93 = arith.select %15, %91, %92 : vector<8x128xi1>, vector<8x128xf32>
    %94 = arith.minimumf %90, %93 : vector<8x128xf32>
    %95 = arith.maximumf %90, %93 : vector<8x128xf32>
    %96 = arith.select %22, %94, %95 : vector<8x128xi1>, vector<8x128xf32>
    %c7_i32_31 = arith.constant 7 : i32
    %97 = tpu.dynamic_rotate %96 by %c7_i32_31 dim 0 : vector<8x128xf32>, i32 -> vector<8x128xf32>
    %c1_i32_32 = arith.constant 1 : i32
    %98 = tpu.dynamic_rotate %96 by %c1_i32_32 dim 0 : vector<8x128xf32>, i32 -> vector<8x128xf32>
    %99 = arith.select %26, %97, %98 : vector<8x128xi1>, vector<8x128xf32>
    %100 = arith.minimumf %96, %99 : vector<8x128xf32>
    %101 = arith.maximumf %96, %99 : vector<8x128xf32>
    %102 = arith.select %33, %100, %101 : vector<8x128xi1>, vector<8x128xf32>
    %c4_i32_33 = arith.constant 4 : i32
    %103 = tpu.dynamic_rotate %102 by %c4_i32_33 dim 0 : vector<8x128xf32>, i32 -> vector<8x128xf32>
    %c4_i32_34 = arith.constant 4 : i32
    %104 = tpu.dynamic_rotate %102 by %c4_i32_34 dim 0 : vector<8x128xf32>, i32 -> vector<8x128xf32>
    %105 = arith.select %37, %103, %104 : vector<8x128xi1>, vector<8x128xf32>
    %106 = arith.minimumf %102, %105 : vector<8x128xf32>
    %107 = arith.maximumf %102, %105 : vector<8x128xf32>
    %108 = arith.select %44, %106, %107 : vector<8x128xi1>, vector<8x128xf32>
    %c6_i32_35 = arith.constant 6 : i32
    %109 = tpu.dynamic_rotate %108 by %c6_i32_35 dim 0 : vector<8x128xf32>, i32 -> vector<8x128xf32>
    %c2_i32_36 = arith.constant 2 : i32
    %110 = tpu.dynamic_rotate %108 by %c2_i32_36 dim 0 : vector<8x128xf32>, i32 -> vector<8x128xf32>
    %111 = arith.select %48, %109, %110 : vector<8x128xi1>, vector<8x128xf32>
    %112 = arith.minimumf %108, %111 : vector<8x128xf32>
    %113 = arith.maximumf %108, %111 : vector<8x128xf32>
    %114 = arith.select %55, %112, %113 : vector<8x128xi1>, vector<8x128xf32>
    %c7_i32_37 = arith.constant 7 : i32
    %115 = tpu.dynamic_rotate %114 by %c7_i32_37 dim 0 : vector<8x128xf32>, i32 -> vector<8x128xf32>
    %c1_i32_38 = arith.constant 1 : i32
    %116 = tpu.dynamic_rotate %114 by %c1_i32_38 dim 0 : vector<8x128xf32>, i32 -> vector<8x128xf32>
    %117 = arith.select %59, %115, %116 : vector<8x128xi1>, vector<8x128xf32>
    %118 = arith.minimumf %114, %117 : vector<8x128xf32>
    %119 = arith.maximumf %114, %117 : vector<8x128xf32>
    %120 = arith.select %66, %118, %119 : vector<8x128xi1>, vector<8x128xf32>
    %121 = vector.extract_strided_slice %83 {offsets = [8, 0], sizes = [8, 128], strides = [1, 1]} : vector<16x128xf32> to vector<8x128xf32>
    %c7_i32_39 = arith.constant 7 : i32
    %122 = tpu.dynamic_rotate %121 by %c7_i32_39 dim 0 : vector<8x128xf32>, i32 -> vector<8x128xf32>
    %c1_i32_40 = arith.constant 1 : i32
    %123 = tpu.dynamic_rotate %121 by %c1_i32_40 dim 0 : vector<8x128xf32>, i32 -> vector<8x128xf32>
    %124 = arith.select %4, %122, %123 : vector<8x128xi1>, vector<8x128xf32>
    %125 = arith.minimumf %121, %124 : vector<8x128xf32>
    %126 = arith.maximumf %121, %124 : vector<8x128xf32>
    %127 = arith.select %11, %125, %126 : vector<8x128xi1>, vector<8x128xf32>
    %c6_i32_41 = arith.constant 6 : i32
    %128 = tpu.dynamic_rotate %127 by %c6_i32_41 dim 0 : vector<8x128xf32>, i32 -> vector<8x128xf32>
    %c2_i32_42 = arith.constant 2 : i32
    %129 = tpu.dynamic_rotate %127 by %c2_i32_42 dim 0 : vector<8x128xf32>, i32 -> vector<8x128xf32>
    %130 = arith.select %15, %128, %129 : vector<8x128xi1>, vector<8x128xf32>
    %131 = arith.minimumf %127, %130 : vector<8x128xf32>
    %132 = arith.maximumf %127, %130 : vector<8x128xf32>
    %133 = arith.select %22, %131, %132 : vector<8x128xi1>, vector<8x128xf32>
    %c7_i32_43 = arith.constant 7 : i32
    %134 = tpu.dynamic_rotate %133 by %c7_i32_43 dim 0 : vector<8x128xf32>, i32 -> vector<8x128xf32>
    %c1_i32_44 = arith.constant 1 : i32
    %135 = tpu.dynamic_rotate %133 by %c1_i32_44 dim 0 : vector<8x128xf32>, i32 -> vector<8x128xf32>
    %136 = arith.select %26, %134, %135 : vector<8x128xi1>, vector<8x128xf32>
    %137 = arith.minimumf %133, %136 : vector<8x128xf32>
    %138 = arith.maximumf %133, %136 : vector<8x128xf32>
    %139 = arith.select %33, %137, %138 : vector<8x128xi1>, vector<8x128xf32>
    %c4_i32_45 = arith.constant 4 : i32
    %140 = tpu.dynamic_rotate %139 by %c4_i32_45 dim 0 : vector<8x128xf32>, i32 -> vector<8x128xf32>
    %c4_i32_46 = arith.constant 4 : i32
    %141 = tpu.dynamic_rotate %139 by %c4_i32_46 dim 0 : vector<8x128xf32>, i32 -> vector<8x128xf32>
    %142 = arith.select %37, %140, %141 : vector<8x128xi1>, vector<8x128xf32>
    %143 = arith.minimumf %139, %142 : vector<8x128xf32>
    %144 = arith.maximumf %139, %142 : vector<8x128xf32>
    %145 = arith.select %44, %143, %144 : vector<8x128xi1>, vector<8x128xf32>
    %c6_i32_47 = arith.constant 6 : i32
    %146 = tpu.dynamic_rotate %145 by %c6_i32_47 dim 0 : vector<8x128xf32>, i32 -> vector<8x128xf32>
    %c2_i32_48 = arith.constant 2 : i32
    %147 = tpu.dynamic_rotate %145 by %c2_i32_48 dim 0 : vector<8x128xf32>, i32 -> vector<8x128xf32>
    %148 = arith.select %48, %146, %147 : vector<8x128xi1>, vector<8x128xf32>
    %149 = arith.minimumf %145, %148 : vector<8x128xf32>
    %150 = arith.maximumf %145, %148 : vector<8x128xf32>
    %151 = arith.select %55, %149, %150 : vector<8x128xi1>, vector<8x128xf32>
    %c7_i32_49 = arith.constant 7 : i32
    %152 = tpu.dynamic_rotate %151 by %c7_i32_49 dim 0 : vector<8x128xf32>, i32 -> vector<8x128xf32>
    %c1_i32_50 = arith.constant 1 : i32
    %153 = tpu.dynamic_rotate %151 by %c1_i32_50 dim 0 : vector<8x128xf32>, i32 -> vector<8x128xf32>
    %154 = arith.select %59, %152, %153 : vector<8x128xi1>, vector<8x128xf32>
    %155 = arith.minimumf %151, %154 : vector<8x128xf32>
    %156 = arith.maximumf %151, %154 : vector<8x128xf32>
    %157 = arith.select %66, %155, %156 : vector<8x128xi1>, vector<8x128xf32>
    %158 = arith.subf %120, %157 : vector<8x128xf32>
    %159 = arith.mulf %158, %158 : vector<8x128xf32>
    %cst_51 = arith.constant dense<0.000000e+00> : vector<128xf32>
    %160 = vector.multi_reduction <add>, %159, %cst_51 [0] : vector<8x128xf32> to vector<128xf32>
    %161 = vector.shape_cast %160 : vector<128xf32> to vector<1x128xf32>
    %cst_52 = arith.constant 9.765625E-4 : f32
    %162 = vector.broadcast %cst_52 : f32 to vector<1x128xf32>
    %163 = arith.mulf %161, %162 : vector<1x128xf32>
    %c2_i32_53 = arith.constant 2 : i32
    %164 = arith.muli %arg0, %c2_i32_53 : i32
    %c1_i32_54 = arith.constant 1 : i32
    %165 = arith.addi %164, %c1_i32_54 : i32
    %166 = arith.index_cast %165 : i32 to index
    %167 = memref.load %arg1[%166] : memref<4xi32, #tpu.memory_space<smem>>
    %168 = arith.index_cast %165 : i32 to index
    %169 = memref.load %arg2[%168] : memref<4xi32, #tpu.memory_space<smem>>
    %170 = arith.index_cast %167 : i32 to index
    %c0_55 = arith.constant 0 : index
    %c0_56 = arith.constant 0 : index
    %171 = vector.load %arg3[%170, %c0_55, %c0_56] : memref<3x8x32xf32, #tpu.memory_space<vmem>>, vector<1x8x32xf32>
    %172 = vector.shape_cast %171 : vector<1x8x32xf32> to vector<8x32xf32>
    %173 = arith.index_cast %169 : i32 to index
    %c0_57 = arith.constant 0 : index
    %c0_58 = arith.constant 0 : index
    %174 = vector.load %arg3[%173, %c0_57, %c0_58] : memref<3x8x32xf32, #tpu.memory_space<vmem>>, vector<1x8x32xf32>
    %175 = vector.shape_cast %174 : vector<1x8x32xf32> to vector<8x32xf32>
    %176 = tpu.concatenate %172, %175 in 0 : vector<8x32xf32>, vector<8x32xf32> -> vector<16x32xf32>
    %177 = arith.truncf %176 : vector<16x32xf32> to vector<16x32xbf16>
    %c1 = arith.constant 1 : index
    %c0_59 = arith.constant 0 : index
    %c0_60 = arith.constant 0 : index
    %178 = vector.load %arg4[%c1, %c0_59, %c0_60] : memref<2x32x128xbf16, #tpu.memory_space<vmem>>, vector<1x32x128xbf16>
    %179 = vector.shape_cast %178 : vector<1x32x128xbf16> to vector<32x128xbf16>
    %cst_61 = arith.constant dense<0.000000e+00> : vector<16x128xf32>
    %180 = tpu.matmul %177, %179, %cst_61 {dimension_numbers = #tpu.dot_dimension_numbers<[1], [0], [0], [1], [0, 0, 1, 1], [], []>} : vector<16x32xbf16>, vector<32x128xbf16>, vector<16x128xf32> -> vector<16x128xf32>
    %181 = vector.extract_strided_slice %180 {offsets = [0, 0], sizes = [8, 128], strides = [1, 1]} : vector<16x128xf32> to vector<8x128xf32>
    %c7_i32_62 = arith.constant 7 : i32
    %182 = tpu.dynamic_rotate %181 by %c7_i32_62 dim 0 : vector<8x128xf32>, i32 -> vector<8x128xf32>
    %c1_i32_63 = arith.constant 1 : i32
    %183 = tpu.dynamic_rotate %181 by %c1_i32_63 dim 0 : vector<8x128xf32>, i32 -> vector<8x128xf32>
    %184 = arith.select %4, %182, %183 : vector<8x128xi1>, vector<8x128xf32>
    %185 = arith.minimumf %181, %184 : vector<8x128xf32>
    %186 = arith.maximumf %181, %184 : vector<8x128xf32>
    %187 = arith.select %11, %185, %186 : vector<8x128xi1>, vector<8x128xf32>
    %c6_i32_64 = arith.constant 6 : i32
    %188 = tpu.dynamic_rotate %187 by %c6_i32_64 dim 0 : vector<8x128xf32>, i32 -> vector<8x128xf32>
    %c2_i32_65 = arith.constant 2 : i32
    %189 = tpu.dynamic_rotate %187 by %c2_i32_65 dim 0 : vector<8x128xf32>, i32 -> vector<8x128xf32>
    %190 = arith.select %15, %188, %189 : vector<8x128xi1>, vector<8x128xf32>
    %191 = arith.minimumf %187, %190 : vector<8x128xf32>
    %192 = arith.maximumf %187, %190 : vector<8x128xf32>
    %193 = arith.select %22, %191, %192 : vector<8x128xi1>, vector<8x128xf32>
    %c7_i32_66 = arith.constant 7 : i32
    %194 = tpu.dynamic_rotate %193 by %c7_i32_66 dim 0 : vector<8x128xf32>, i32 -> vector<8x128xf32>
    %c1_i32_67 = arith.constant 1 : i32
    %195 = tpu.dynamic_rotate %193 by %c1_i32_67 dim 0 : vector<8x128xf32>, i32 -> vector<8x128xf32>
    %196 = arith.select %26, %194, %195 : vector<8x128xi1>, vector<8x128xf32>
    %197 = arith.minimumf %193, %196 : vector<8x128xf32>
    %198 = arith.maximumf %193, %196 : vector<8x128xf32>
    %199 = arith.select %33, %197, %198 : vector<8x128xi1>, vector<8x128xf32>
    %c4_i32_68 = arith.constant 4 : i32
    %200 = tpu.dynamic_rotate %199 by %c4_i32_68 dim 0 : vector<8x128xf32>, i32 -> vector<8x128xf32>
    %c4_i32_69 = arith.constant 4 : i32
    %201 = tpu.dynamic_rotate %199 by %c4_i32_69 dim 0 : vector<8x128xf32>, i32 -> vector<8x128xf32>
    %202 = arith.select %37, %200, %201 : vector<8x128xi1>, vector<8x128xf32>
    %203 = arith.minimumf %199, %202 : vector<8x128xf32>
    %204 = arith.maximumf %199, %202 : vector<8x128xf32>
    %205 = arith.select %44, %203, %204 : vector<8x128xi1>, vector<8x128xf32>
    %c6_i32_70 = arith.constant 6 : i32
    %206 = tpu.dynamic_rotate %205 by %c6_i32_70 dim 0 : vector<8x128xf32>, i32 -> vector<8x128xf32>
    %c2_i32_71 = arith.constant 2 : i32
    %207 = tpu.dynamic_rotate %205 by %c2_i32_71 dim 0 : vector<8x128xf32>, i32 -> vector<8x128xf32>
    %208 = arith.select %48, %206, %207 : vector<8x128xi1>, vector<8x128xf32>
    %209 = arith.minimumf %205, %208 : vector<8x128xf32>
    %210 = arith.maximumf %205, %208 : vector<8x128xf32>
    %211 = arith.select %55, %209, %210 : vector<8x128xi1>, vector<8x128xf32>
    %c7_i32_72 = arith.constant 7 : i32
    %212 = tpu.dynamic_rotate %211 by %c7_i32_72 dim 0 : vector<8x128xf32>, i32 -> vector<8x128xf32>
    %c1_i32_73 = arith.constant 1 : i32
    %213 = tpu.dynamic_rotate %211 by %c1_i32_73 dim 0 : vector<8x128xf32>, i32 -> vector<8x128xf32>
    %214 = arith.select %59, %212, %213 : vector<8x128xi1>, vector<8x128xf32>
    %215 = arith.minimumf %211, %214 : vector<8x128xf32>
    %216 = arith.maximumf %211, %214 : vector<8x128xf32>
    %217 = arith.select %66, %215, %216 : vector<8x128xi1>, vector<8x128xf32>
    %218 = vector.extract_strided_slice %180 {offsets = [8, 0], sizes = [8, 128], strides = [1, 1]} : vector<16x128xf32> to vector<8x128xf32>
    %c7_i32_74 = arith.constant 7 : i32
    %219 = tpu.dynamic_rotate %218 by %c7_i32_74 dim 0 : vector<8x128xf32>, i32 -> vector<8x128xf32>
    %c1_i32_75 = arith.constant 1 : i32
    %220 = tpu.dynamic_rotate %218 by %c1_i32_75 dim 0 : vector<8x128xf32>, i32 -> vector<8x128xf32>
    %221 = arith.select %4, %219, %220 : vector<8x128xi1>, vector<8x128xf32>
    %222 = arith.minimumf %218, %221 : vector<8x128xf32>
    %223 = arith.maximumf %218, %221 : vector<8x128xf32>
    %224 = arith.select %11, %222, %223 : vector<8x128xi1>, vector<8x128xf32>
    %c6_i32_76 = arith.constant 6 : i32
    %225 = tpu.dynamic_rotate %224 by %c6_i32_76 dim 0 : vector<8x128xf32>, i32 -> vector<8x128xf32>
    %c2_i32_77 = arith.constant 2 : i32
    %226 = tpu.dynamic_rotate %224 by %c2_i32_77 dim 0 : vector<8x128xf32>, i32 -> vector<8x128xf32>
    %227 = arith.select %15, %225, %226 : vector<8x128xi1>, vector<8x128xf32>
    %228 = arith.minimumf %224, %227 : vector<8x128xf32>
    %229 = arith.maximumf %224, %227 : vector<8x128xf32>
    %230 = arith.select %22, %228, %229 : vector<8x128xi1>, vector<8x128xf32>
    %c7_i32_78 = arith.constant 7 : i32
    %231 = tpu.dynamic_rotate %230 by %c7_i32_78 dim 0 : vector<8x128xf32>, i32 -> vector<8x128xf32>
    %c1_i32_79 = arith.constant 1 : i32
    %232 = tpu.dynamic_rotate %230 by %c1_i32_79 dim 0 : vector<8x128xf32>, i32 -> vector<8x128xf32>
    %233 = arith.select %26, %231, %232 : vector<8x128xi1>, vector<8x128xf32>
    %234 = arith.minimumf %230, %233 : vector<8x128xf32>
    %235 = arith.maximumf %230, %233 : vector<8x128xf32>
    %236 = arith.select %33, %234, %235 : vector<8x128xi1>, vector<8x128xf32>
    %c4_i32_80 = arith.constant 4 : i32
    %237 = tpu.dynamic_rotate %236 by %c4_i32_80 dim 0 : vector<8x128xf32>, i32 -> vector<8x128xf32>
    %c4_i32_81 = arith.constant 4 : i32
    %238 = tpu.dynamic_rotate %236 by %c4_i32_81 dim 0 : vector<8x128xf32>, i32 -> vector<8x128xf32>
    %239 = arith.select %37, %237, %238 : vector<8x128xi1>, vector<8x128xf32>
    %240 = arith.minimumf %236, %239 : vector<8x128xf32>
    %241 = arith.maximumf %236, %239 : vector<8x128xf32>
    %242 = arith.select %44, %240, %241 : vector<8x128xi1>, vector<8x128xf32>
    %c6_i32_82 = arith.constant 6 : i32
    %243 = tpu.dynamic_rotate %242 by %c6_i32_82 dim 0 : vector<8x128xf32>, i32 -> vector<8x128xf32>
    %c2_i32_83 = arith.constant 2 : i32
    %244 = tpu.dynamic_rotate %242 by %c2_i32_83 dim 0 : vector<8x128xf32>, i32 -> vector<8x128xf32>
    %245 = arith.select %48, %243, %244 : vector<8x128xi1>, vector<8x128xf32>
    %246 = arith.minimumf %242, %245 : vector<8x128xf32>
    %247 = arith.maximumf %242, %245 : vector<8x128xf32>
    %248 = arith.select %55, %246, %247 : vector<8x128xi1>, vector<8x128xf32>
    %c7_i32_84 = arith.constant 7 : i32
    %249 = tpu.dynamic_rotate %248 by %c7_i32_84 dim 0 : vector<8x128xf32>, i32 -> vector<8x128xf32>
    %c1_i32_85 = arith.constant 1 : i32
    %250 = tpu.dynamic_rotate %248 by %c1_i32_85 dim 0 : vector<8x128xf32>, i32 -> vector<8x128xf32>
    %251 = arith.select %59, %249, %250 : vector<8x128xi1>, vector<8x128xf32>
    %252 = arith.minimumf %248, %251 : vector<8x128xf32>
    %253 = arith.maximumf %248, %251 : vector<8x128xf32>
    %254 = arith.select %66, %252, %253 : vector<8x128xi1>, vector<8x128xf32>
    %255 = arith.subf %217, %254 : vector<8x128xf32>
    %256 = arith.mulf %255, %255 : vector<8x128xf32>
    %cst_86 = arith.constant dense<0.000000e+00> : vector<128xf32>
    %257 = vector.multi_reduction <add>, %256, %cst_86 [0] : vector<8x128xf32> to vector<128xf32>
    %258 = vector.shape_cast %257 : vector<128xf32> to vector<1x128xf32>
    %cst_87 = arith.constant 9.765625E-4 : f32
    %259 = vector.broadcast %cst_87 : f32 to vector<1x128xf32>
    %260 = arith.mulf %258, %259 : vector<1x128xf32>
    %cst_88 = arith.constant 0.000000e+00 : f32
    %261 = vector.broadcast %cst_88 : f32 to vector<6x128xf32>
    %262 = tpu.concatenate %163, %260, %261 in 0 : vector<1x128xf32>, vector<1x128xf32>, vector<6x128xf32> -> vector<8x128xf32>
    %c0_89 = arith.constant 0 : index
    %c0_90 = arith.constant 0 : index
    %263 = vector.load %arg5[%c0_89, %c0_90] : memref<8x128xf32, #tpu.memory_space<vmem>>, vector<8x128xf32>
    tpu.vector_store %arg5[%c0_89, %c0_90], %262 {strides = array<i32>} : memref<8x128xf32, #tpu.memory_space<vmem>>, vector<8x128xf32>,
    return
  }
  func.func @transform_0(%arg0: i32, %arg1: memref<4xi32, #tpu.memory_space<smem>>, %arg2: memref<4xi32, #tpu.memory_space<smem>>) -> (i32, i32, i32) {
    %c0_i32 = arith.constant 0 : i32
    %c0_i32_0 = arith.constant 0 : i32
    %c0_i32_1 = arith.constant 0 : i32
    %c0_i32_2 = arith.constant 0 : i32
    return %c0_i32, %c0_i32_0, %c0_i32_1 : i32, i32, i32
  }
  func.func @transform_1(%arg0: i32, %arg1: memref<4xi32, #tpu.memory_space<smem>>, %arg2: memref<4xi32, #tpu.memory_space<smem>>) -> (i32, i32, i32) {
    %c0_i32 = arith.constant 0 : i32
    %c0_i32_0 = arith.constant 0 : i32
    %c0_i32_1 = arith.constant 0 : i32
    return %arg0, %c0_i32, %c0_i32_0 : i32, i32, i32
  }
  func.func @transform_2(%arg0: i32, %arg1: memref<4xi32, #tpu.memory_space<smem>>, %arg2: memref<4xi32, #tpu.memory_space<smem>>) -> (i32, i32) {
    %c0_i32 = arith.constant 0 : i32
    %c0_i32_0 = arith.constant 0 : i32
    return %arg0, %c0_i32 : i32, i32
  }
}

</mosaic_0001>

<bundles_post_ra>
// kernel: tpu_custom_call.1
= control target key start
LH: loop header
LB: loop body
LE: loop exit
PB: predicated region body
PF: predicated region fallthrough
CT: control target
= control target key end

     0   :  { %s895_s15 = smov [#allocation3]   ;;  %s1250_s0 = inlined_call_operand.hbm [shape: s32[4], index: 0, kind: input, shape index: {}]   ;;  %s1251_s2 = inlined_call_operand.hbm [shape: f32[3,8,32], index: 2, kind: input, shape index: {}]   ;;  %s1252_s3 = inlined_call_operand.hbm [shape: bf16[4,32,128], index: 3, kind: input, shape index: {}]   ;;  %s1253_s4 = inlined_call_operand.hbm [shape: f32[16,128], index: 4, kind: output, shape index: {}]   ;;  %s1254_s1 = inlined_call_operand.vmem [shape: s32[4], index: 1, kind: input, shape index: {}]  }
   0x1   :  { %10 = dma.hbm_to_smem %s1250_s0, 16, %s895_s15, [#allocation2] }
   0x2   :  { %s11_s20 = sshll.u32 %s1254_s1, 4  ;;  %s12_s20 = int_to_ptr.vmem [resolvable:$true] %s11_s20 }
   0x3   :  { %s757_s21 = scalar_lea.vmem %s12_s20, 16  ;;  %p762_p1 = scmp.lt.s32.totalorder %s12_s20, %s12_s20 }
   0x4   :  { %p758_p0 = scmp.ne.s32.totalorder %s12_s20, %s757_s21  ;;  %p763_p2 = scmp.lt.s32.totalorder %s757_s21, %s757_s21 }
   0x6   :  { %p764_p3 = por %p763_p2, %p762_p1 }
   0x8   :  { %p765_p4 = pnand %p764_p3, %p758_p0 }
   0xa   :  { %768 = shalt.err (!%p765_p4)  }
   0xb   :  { %s896_s22 = smov [#allocation4]  }
   0xc   :  { %14 = dma.vmem_to_smem %s12_s20, 16, %s896_s22, [#allocation2] }
   0xd   :  { %865 = dma.done.wait [#allocation2], 32 }
   0xe   :  { %866 = vsyncadd [#allocation2], 4294967264 }
   0xf   :  { %16 = sfence }
  0x10   :  { %17 = vsyncpa [#allocation6], 0 }
  0x11   :  { %18 = vsyncpa [#allocation9], 0 }
  0x12   :  { %20 = vsyncpa [#allocation9 + $0x1], 0 }
  0x13   :  { %21 = vsyncpa [#allocation7], 0 }
  0x14   :  { %23 = vsyncpa [#allocation7 + $0x1], 0  ;;  %s937_s0 = smov 0   ;;  %s939_s1 = smov 0  }
  0x15   :  { %s941_s23 = smov 0   ;;  %s943_s24 = smov 0  }
  0x16 LB: > { %s958_s25 = sadd.s32 4294967295, %s893_s24   ;;  %s625_s26 = sadd.s32 4294967294, %s893_s24   ;;  %s893_s24 = sphi %s943_s24, %s1296_s24   ;;  %s889_s23 = sphi %s941_s23, %s1295_s23   ;;  %s885_s1 = sphi %s939_s1, %s1294_s1   ;;  %s881_s0 = sphi %s937_s0, %s1293_s0  }
  0x17   : > { %p70_p5 = scmp.ne.s32.totalorder %s885_s1, %s881_s0  ;;  %p1255_p6 = scmp.eq.s32.totalorder %s958_s25, 0 }
  0x18   : > { %p100_p8 = scmp.eq.s32.totalorder %s625_s26, 1  ;;  %p626_p10 = scmp.ge.s32.totalorder %s893_s24, 1 }
  0x19   : > { %p967_p9 = por %p1255_p6, %p70_p5  ;;  %p107_p12 = scmp.lt.s32.totalorder %s893_s24, 3 }
  0x1a   : > { %p972_p11 = por %p100_p8, %p70_p5  ;;  %s897_s30 = smov [#allocation5]  }
  0x1b   : > { %s1259_s27 = scalar_select %p967_p9, 1, 0 }
  0x1c   : > { %s1260_s28 = scalar_select %p972_p11, 1, 0 }
  0x1d   : > { %p977_p13 = pnand %p626_p10, %p107_p12  ;;  %s119_s5 = sshll.u32 %s897_s30, 4  ;;  %s120_s5 = int_to_ptr.vmem [resolvable:$true] %s119_s5 }
  0x1e   : > { %s991_s7 = sadd.s32 1, %s893_s24   ;;  %s57_s8 = sadd.s32 1, %s889_s23 }
  0x1f   : > { %s1261_s29 = scalar_select %p977_p13, 1, 0 }
  0x20   : > { %p688_p0 = pneg %p977_p13  ;;  %s54_s9 = ssub.s32 %s893_s24, %s991_s7 }
  0x21   : > { %s780_s10 = scalar_lea.vmem %s120_s5, 384  ;;  %p788_p10 = scmp.lt.s32.totalorder %s120_s5, %s120_s5 }
  0x22   : > { %p986_p2 = pnand %p688_p0, %p1255_p6  ;;  %p781_p4 = scmp.ne.s32.totalorder %s120_s5, %s780_s10 }
  0x23   : > { %p789_p12 = scmp.lt.s32.totalorder %s780_s10, %s780_s10 }
  0x24   : > { %p771_p3 = pneg %p986_p2 }
  0x25   : > { %p790_p1 = por %p789_p12, %p788_p10 }
  0x26   : > { %p783_p5 = pnand %p781_p4, %p771_p3 }
  0x28   : > { %p784_p8 = pneg %p783_p5 }
  0x2a   : > { %p791_p7 = pnand %p790_p1, %p784_p8 }
  0x2c   : > { %794 = shalt.err (!%p791_p7)
}
  0x2d   : > { %s898_s11 = smov 128   ;;  %s899_s12 = smov 8  }
  0x2e   : > { %691 = dma.hbm_to_vmem [thread:$0]  (!%p986_p2), %s1251_s2, 384, %s120_s5, [#allocation6], %s898_s11, %s898_s11, %s899_s12  }
  0x2f   : > { %p55_p0 = scmp.eq.s32.totalorder %s54_s9, 0  ;;  %p64_p3 = scmp.ne.s32.totalorder %s889_s23, %s885_s1 }
  0x30   : > { %p65_p1 = scmp.eq.s32.totalorder %s893_s24, 0  ;;  %p701_p7 = scmp.lt.s32.totalorder %s893_s24, 2 }
  0x31   : > { %s1008_s15 = scalar_select %p55_p0, %s889_s23, %s57_s8  }
  0x32   : > { %p66_p4 = por %p65_p1, %p64_p3  ;;  %p1263_p5 = scmp.eq.s32.totalorder %s958_s25, 1 }
  0x33   : > { %s133_s17 = sand.u32 1, %s889_s23   ;;  %s657_s18 = sshll.u32 %s893_s24, 9 }
  0x34   : > { %p1012_p8 = por %p1263_p5, %p64_p3  ;;  %s629_s19 = sshll.u32 %s133_s17, 5 }
  0x35   : > { %s1021_s22 = scalar_lea.hbm %s1252_s3, %s657_s18  ;;  %s137_s26 = scalar_lea.vmem [#allocation8], %s629_s19 }
  0x36   : > { %s1264_s16 = scalar_select %p1012_p8, 1, 0 }
  0x37   : > { %s145_s30 = sshll.u32 %s137_s26, 4  ;;  %p1023_p2 = pnand %p701_p7, %p66_p4  ;;  %s1027_s30 = int_to_ptr.vmem [resolvable:$true] %s145_s30 }
  0x38   : > { %s1029_s6 = scalar_lea.sflag [#allocation9], %s133_s17  ;;  %s795_s8 = scalar_lea.hbm %s1021_s22, 512 }
  0x39   : > { %p796_p10 = scmp.ne.s32.totalorder %s1021_s22, %s795_s8  ;;  %p797_p12 = pneg %p1023_p2 }
  0x3a   : > { %s800_s11 = scalar_lea.hbm %s1252_s3, 1024  ;;  %p801_p1 = scmp.lt.s32.totalorder %s1021_s22, %s1252_s3 }
  0x3b   : > { %p798_p0 = pnand %p797_p12, %p796_p10  ;;  %p802_p7 = scmp.lt.s32.totalorder %s800_s11, %s795_s8 }
  0x3d   : > { %p799_p3 = pneg %p798_p0  ;;  %p803_p4 = por %p802_p7, %p801_p1 }
  0x3f   : > { %p804_p5 = pnand %p803_p4, %p799_p3 }
  0x41   : > { %807 = shalt.err (!%p804_p5)
}
  0x42   : > { %s808_s14 = scalar_lea.vmem %s1027_s30, 512  ;;  %s900_s17 = smov [#allocation8]  }
  0x43   : > { %p809_p6 = scmp.ne.s32.totalorder %s1027_s30, %s808_s14  ;;  %s813_s18 = sshll.u32 %s900_s17, 4  ;;  %s814_s18 = int_to_ptr.vmem [resolvable:$false] %s813_s18 }
  0x44   : > { %s815_s19 = scalar_lea.vmem %s814_s18, 1024  ;;  %p816_p0 = scmp.lt.s32.totalorder %s1027_s30, %s814_s18 }
  0x45   : > { %p811_p11 = pnand %p809_p6, %p797_p12  ;;  %p817_p8 = scmp.lt.s32.totalorder %s815_s19, %s808_s14 }
  0x47   : > { %p812_p10 = pneg %p811_p11  ;;  %p818_p9 = por %p817_p8, %p816_p0 }
  0x49   : > { %p819_p13 = pnand %p818_p9, %p812_p10 }
  0x4b   : > { %822 = shalt.err (!%p819_p13)
}
  0x4c   : > { %s901_s20 = smov 64   ;;  %s902_s21 = smov 4  }
  0x4d   : > { %695 = dma.hbm_to_vmem [thread:$0]  (!%p1023_p2), %s1021_s22, 512, %s1027_s30, %s1029_s6, %s901_s20, %s901_s20, %s902_s21  }
  0x4e   : > { %p1266_p6 = scmp.ne.s32.totalorder %s1261_s29, 0 }
  0x4f   : > { %p1267_p11 = scmp.eq.s32.totalorder (!%p1266_p6), %s958_s25, 0 }
  0x50   : > { %157 = sbr.rel (%p1266_p6) target bundleno = 378 (0x17a), region = 28 }
  0x55   : > { %868 = dma.done.wait (%p1267_p11), [#allocation6], 384   ;;  %p1268_p12 = pmov %p1267_p11 }
  0x56   : > { %s1057_s26 = sand.u32 1, %s885_s1   ;;  %p1269_p9 = scmp.ne.s32.totalorder %s1259_s27, 0 }
  0x57   : > { %870 = vsyncadd (%p1268_p12), [#allocation6], 4294966912  ;;  %s635_s8 = sshll.u32 %s1057_s26, 5  ;;  %s164_s9 = scalar_lea.sflag [#allocation9], %s1057_s26 }
  0x58   : > { %s167_s10 = scalar_lea.vmem [#allocation8], %s635_s8 }
  0x59   : > { %872 = dma.done.wait (%p1269_p9), %s164_s9, 512  }
  0x5a   : > { %874 = vsyncadd (%p1269_p9), %s164_s9, 4294966784  ;;  %s637_s29 = sshll.u32 %s958_s25, 1  ;;  %v903_v0 = vmov 0.0   ;;  %vm904_vm0 = vmmov 0   ;;  %v745_v1 = vld [vmem:[%s167_s10 + $0x8] sm:$0xff]   ;;  %v746_v2 = vld [vmem:[%s167_s10 + $0x18] sm:$0xff]   ;;  %v190_v11 = vlaneseq }
  0x5b   : > { %664 = vmatprep.subr.bf16.mxu0 %v903_v0  ;;  %672 = vmatprep.subr.bf16.mxu1 %v903_v0  ;;  %s221_s22 = sld [smem:[#allocation3 + %s637_s29]]  ;;  %s368_s30 = sadd.s32 1, %s637_s29  ;;  %v747_v3 = vld [vmem:[%s167_s10] sm:$0xff]   ;;  %v748_v4 = vld [vmem:[%s167_s10 + $0x10] sm:$0xff]   ;;  %vm246_vm1 = vcmask 261120  }
  0x5c   : > { %668 = vmatprep.mubr.msk.bf16.mxu0 %vm904_vm0, %v903_v0  ;;  %676 = vmatprep.mubr.msk.bf16.mxu1 %vm904_vm0, %v903_v0  ;;  %s222_s5 = sld [smem:[#allocation4 + %s637_s29]]  ;;  %v1066_v12 = vshrl.u32 %v190_v11, 7  ;;  %s636_s21 = sshll.u32 %s1057_s26, 3  ;;  %vm516_vm0 = vcmask 1040384  }
  0x5d   : > { %s369_s6 = sld [smem:[#allocation3 + %s368_s30]]  ;;  %665 = vmatpush3.bf16.msra.mxu0 %v745_v1  ;;  %673 = vmatpush3.bf16.msra.mxu1 %v746_v2  ;;  %s653_s8 = sshll.u32 %s958_s25, 7 }
  0x5e   : > { %s370_s11 = sld [smem:[#allocation4 + %s368_s30]]  ;;  %666 = vmatprep.subr.bf16.mxu0 %v903_v0  ;;  %674 = vmatprep.subr.bf16.mxu1 %v903_v0  ;;  %v192_v13 = vand.u32 1, %v1066_v12  ;;  %v194_v14 = vand.u32 3, %v1066_v12  ;;  %v198_v15 = vand.u32 2, %v1066_v12  ;;  %v200_v17 = vand.u32 6, %v1066_v12  ;;  %s187_s9 = scalar_lea.vmem [#allocation10], %s636_s21 }
  0x5f   : > { %v204_v27 = vand.u32 5, %v1066_v12  ;;  %s535_s10 = sshll.u32 %s187_s9, 4  ;;  %s1213_s30 = scalar_lea.hbm %s1253_s4, %s653_s8  ;;  %s536_s10 = int_to_ptr.vmem [resolvable:$true] %s535_s10 }
  0x60   : > { %vm1071_vm2 = vcmp.eq.s32.totalorder %v192_v13, 0  ;;  %vm195_vm3 = vcmp.eq.s32.totalorder %v194_v14, 0  ;;  %vm196_vm4 = vcmp.eq.s32.totalorder %v194_v14, 3  ;;  %vm1080_vm6 = vcmp.eq.s32.totalorder %v198_v15, 0  ;;  %p1290_p8 = scmp.ne.s32.totalorder %s1264_s16, 0  ;;  %s905_s25 = smov [#allocation10]  }
  0x61   : > { %s638_s12 = sshll.u32 %s221_s22, 3  ;;  %667 = vmatpush3.bf16.msra.mxu0 %v747_v3  ;;  %675 = vmatpush3.bf16.msra.mxu1 %v748_v4  ;;  %vm1076_vm5 = vmor %vm195_vm3, %vm196_vm4  ;;  %vm1087_vm7 = vcmp.eq.s32.totalorder %v200_v17, 0  ;;  %vm202_vm8 = vcmp.eq.s32.totalorder %v200_v17, 6  ;;  %vm1105_vm10 = vcmp.eq.s32.totalorder %v204_v27, 0  ;;  %vm206_vm11 = vcmp.eq.s32.totalorder %v204_v27, 5 }
  0x62   : > { %s639_s27 = sshll.u32 %s222_s5, 3  ;;  %s224_s13 = scalar_lea.vmem [#allocation5], %s638_s12  ;;  %vm1101_vm9 = vmor %vm1087_vm7, %vm202_vm8  ;;  %v208_v14 = vand.u32 12, %v1066_v12 }
  0x63   : > { %v225_v5 = vld [vmem:[%s224_s13] sm:$0xff]  ;;  %s227_s14 = scalar_lea.vmem [#allocation5], %s639_s27  ;;  %s643_s17 = sshll.u32 %s369_s6, 3  ;;  %vm1125_vm12 = vmor %vm1105_vm10, %vm206_vm11 }
  0x64   : > { %v228_v6 = vld [vmem:[%s227_s14] sm:$0xff]  ;;  %s644_s18 = sshll.u32 %s370_s11, 3  ;;  %s372_s19 = scalar_lea.vmem [#allocation5], %s643_s17  ;;  %vm1140_vm13 = vcmp.eq.s32.totalorder %v208_v14, 0  ;;  %v216_v14 = vand.u32 9, %v1066_v12 }
  0x65   : > { %v229_v7 = vpack.c.bf16 %v228_v6, %v225_v5  ;;  %v373_v8 = vld [vmem:[%s372_s19] sm:$0xff]  ;;  %s375_s20 = scalar_lea.vmem [#allocation5], %s644_s18  ;;  %s522_s5 = scalar_lea.sflag [#allocation7], %s1057_s26 }
  0x66   : > { %v376_v9 = vld [vmem:[%s375_s20] sm:$0xff]  ;;  %vm1184_vm15 = vcmp.eq.s32.totalorder %v216_v14, 0  ;;  %s823_s6 = scalar_lea.vmem %s536_s10, 128  ;;  %s827_s11 = sshll.u32 %s905_s25, 4  ;;  %s828_s11 = int_to_ptr.vmem [resolvable:$false] %s827_s11 }
  0x67   : > { %v377_v10 = vpack.c.bf16 %v376_v9, %v373_v8  ;;  %669 = vmatmul.mubr.msk.bf16.vlgmr.msra.gmra.mxu0 %vm246_vm1, %v229_v7  ;;  %p824_p13 = scmp.ne.s32.totalorder %s536_s10, %s823_s6  ;;  %s829_s12 = scalar_lea.vmem %s828_s11, 256 }
  0x68   : > { %p830_p1 = scmp.lt.s32.totalorder %s536_s10, %s828_s11  ;;  %p831_p7 = scmp.lt.s32.totalorder %s829_s12, %s823_s6 }
  0x69   : > { %677 = vmatmul.mubr.msk.bf16.vlgmr.msra.gmra.mxu1 %vm246_vm1, %v377_v10  ;;  %vm518_vm1 = vcmask 1041408   ;;  %p825_p2 = pnand %p824_p13, %p1290_p8 }
  0x6a   : > { %p832_p4 = por %p831_p7, %p830_p1 }
  0x6b   : > { %p826_p3 = pneg %p825_p2 }
  0x6d   : > { %p833_p5 = pnand %p832_p4, %p826_p3 }
 0x127   : > { %v284_v18 = vpop.f32.mrf.mxu0 }
 0x128   : > { %v291_v19 = vrot.slane %v284_v18, 1  ;;  %v292_v20 = vrot.slane %v284_v18, 7 }
 0x129   : > { %v432_v21 = vpop.f32.mrf.mxu1  ;;  %v670_v24 = vpop.f32.mrf.mxu0 }
 0x12a   : > { %v439_v22 = vrot.slane %v432_v21, 1  ;;  %v440_v23 = vrot.slane %v432_v21, 7  ;;  %v293_v28 = vsel %vm1071_vm2, %v291_v19, %v292_v20 }
 0x12b   : > { %v678_v29 = vpop.f32.mrf.mxu1  ;;  %v294_v31 = vmin.f32 %v284_v18, %v293_v28  ;;  %v295_v32 = vmax.f32 %v284_v18, %v293_v28  ;;  %v287_v34 = vpop.f32.mrf.mxu0 }
 0x12c   : > { %v441_v33 = vsel %vm1071_vm2, %v439_v22, %v440_v23  ;;  %v325_v37 = vrot.slane %v287_v34, 1  ;;  %v326_v38 = vrot.slane %v287_v34, 7 }
 0x12d   : > { %v442_v35 = vmin.f32 %v432_v21, %v441_v33  ;;  %v443_v36 = vmax.f32 %v432_v21, %v441_v33  ;;  %v435_v39 = vpop.f32.mrf.mxu1  ;;  %v296_v40 = vsel %vm1076_vm5, %v294_v31, %v295_v32  ;;  %v671_v43 = vpop.f32.mrf.mxu0 }
 0x12e   : > { %v473_v41 = vrot.slane %v435_v39, 1  ;;  %v474_v42 = vrot.slane %v435_v39, 7  ;;  %v297_v44 = vrot.slane %v296_v40, 2  ;;  %v298_v45 = vrot.slane %v296_v40, 6 }
 0x12f   : > { %v444_v46 = vsel %vm1076_vm5, %v442_v35, %v443_v36  ;;  %v327_v47 = vsel %vm1071_vm2, %v325_v37, %v326_v38  ;;  %v679_v48 = vpop.f32.mrf.mxu1 }
 0x130   : > { %v445_v49 = vrot.slane %v444_v46, 2  ;;  %v446_v50 = vrot.slane %v444_v46, 6  ;;  %v328_v51 = vmin.f32 %v287_v34, %v327_v47  ;;  %v329_v52 = vmax.f32 %v287_v34, %v327_v47 }
 0x131   : > { %v299_v55 = vsel %vm1080_vm6, %v297_v44, %v298_v45  ;;  %v475_v56 = vsel %vm1071_vm2, %v473_v41, %v474_v42  ;;  %v212_v45 = vand.u32 10, %v1066_v12 }
 0x132   : > { %v300_v57 = vmin.f32 %v296_v40, %v299_v55  ;;  %v301_v58 = vmax.f32 %v296_v40, %v299_v55  ;;  %v447_v59 = vsel %vm1080_vm6, %v445_v49, %v446_v50  ;;  %v330_v60 = vsel %vm1076_vm5, %v328_v51, %v329_v52 }
 0x133   : > { %v448_v61 = vmin.f32 %v444_v46, %v447_v59  ;;  %v449_v62 = vmax.f32 %v444_v46, %v447_v59  ;;  %v331_v63 = vrot.slane %v330_v60, 2  ;;  %v332_v0 = vrot.slane %v330_v60, 6 }
 0x134   : > { %v302_v1 = vsel %vm1101_vm9, %v300_v57, %v301_v58  ;;  %v476_v2 = vmin.f32 %v435_v39, %v475_v56  ;;  %v477_v3 = vmax.f32 %v435_v39, %v475_v56  ;;  %vm1159_vm14 = vcmp.eq.s32.totalorder %v212_v45, 0 }
 0x135   : > { %v303_v4 = vrot.slane %v302_v1, 1  ;;  %v304_v5 = vrot.slane %v302_v1, 7  ;;  %v450_v6 = vsel %vm1101_vm9, %v448_v61, %v449_v62  ;;  %v333_v7 = vsel %vm1080_vm6, %v331_v63, %v332_v0 }
 0x136   : > { %v451_v8 = vrot.slane %v450_v6, 1  ;;  %v452_v9 = vrot.slane %v450_v6, 7  ;;  %v334_v10 = vmin.f32 %v330_v60, %v333_v7  ;;  %v335_v11 = vmax.f32 %v330_v60, %v333_v7 }
 0x137   : > { %v305_v15 = vsel %vm1071_vm2, %v303_v4, %v304_v5  ;;  %v478_v17 = vsel %vm1076_vm5, %v476_v2, %v477_v3 }
 0x138   : > { %v306_v18 = vmin.f32 %v302_v1, %v305_v15  ;;  %v307_v19 = vmax.f32 %v302_v1, %v305_v15  ;;  %v453_v20 = vsel %vm1071_vm2, %v451_v8, %v452_v9  ;;  %v336_v21 = vsel %vm1101_vm9, %v334_v10, %v335_v11 }
 0x139   : > { %v454_v22 = vmin.f32 %v450_v6, %v453_v20  ;;  %v455_v23 = vmax.f32 %v450_v6, %v453_v20  ;;  %v337_v24 = vrot.slane %v336_v21, 1  ;;  %v338_v27 = vrot.slane %v336_v21, 7 }
 0x13a   : > { %v308_v28 = vsel %vm1125_vm12, %v306_v18, %v307_v19  ;;  %v479_v29 = vrot.slane %v478_v17, 2  ;;  %v480_v30 = vrot.slane %v478_v17, 6 }
 0x13b   : > { %v309_v31 = vrot.slane %v308_v28, 4  ;;  %v456_v32 = vsel %vm1125_vm12, %v454_v22, %v455_v23  ;;  %v339_v33 = vsel %vm1071_vm2, %v337_v24, %v338_v27 }
 0x13c   : > { %v457_v34 = vrot.slane %v456_v32, 4  ;;  %v340_v35 = vmin.f32 %v336_v21, %v339_v33  ;;  %v341_v36 = vmax.f32 %v336_v21, %v339_v33  ;;  %v481_v37 = vsel %vm1080_vm6, %v479_v29, %v480_v30 }
 0x13d   : > { %v310_v38 = vmin.f32 %v308_v28, %v309_v31  ;;  %v311_v39 = vmax.f32 %v308_v28, %v309_v31  ;;  %v482_v40 = vmin.f32 %v478_v17, %v481_v37  ;;  %v483_v41 = vmax.f32 %v478_v17, %v481_v37 }
 0x13e   : > { %v458_v42 = vmin.f32 %v456_v32, %v457_v34  ;;  %v459_v43 = vmax.f32 %v456_v32, %v457_v34  ;;  %v342_v44 = vsel %vm1125_vm12, %v340_v35, %v341_v36 }
 0x13f   : > { %v312_v46 = vsel %vm1140_vm13, %v310_v38, %v311_v39  ;;  %v343_v47 = vrot.slane %v342_v44, 4  ;;  %v484_v48 = vsel %vm1101_vm9, %v482_v40, %v483_v41 }
 0x140   : > { %v313_v49 = vrot.slane %v312_v46, 2  ;;  %v314_v50 = vrot.slane %v312_v46, 6  ;;  %v460_v51 = vsel %vm1140_vm13, %v458_v42, %v459_v43  ;;  %v485_v52 = vrot.slane %v484_v48, 1 }
 0x141   : > { %v461_v54 = vrot.slane %v460_v51, 2  ;;  %v462_v55 = vrot.slane %v460_v51, 6  ;;  %v344_v56 = vmin.f32 %v342_v44, %v343_v47  ;;  %v345_v57 = vmax.f32 %v342_v44, %v343_v47 }
 0x142   : > { %v486_v58 = vrot.slane %v484_v48, 7  ;;  %v315_v60 = vsel %vm1080_vm6, %v313_v49, %v314_v50 }
 0x143   : > { %v346_v53 = vsel %vm1140_vm13, %v344_v56, %v345_v57  ;;  %v316_v61 = vmin.f32 %v312_v46, %v315_v60  ;;  %v317_v62 = vmax.f32 %v312_v46, %v315_v60  ;;  %v463_v63 = vsel %vm1080_vm6, %v461_v54, %v462_v55 }
 0x144   : > { %v347_v0 = vrot.slane %v346_v53, 2  ;;  %v348_v1 = vrot.slane %v346_v53, 6  ;;  %v487_v2 = vsel %vm1071_vm2, %v485_v52, %v486_v58  ;;  %v464_v3 = vmin.f32 %v460_v51, %v463_v63 }
 0x145   : > { %v488_v4 = vmin.f32 %v484_v48, %v487_v2  ;;  %v489_v5 = vmax.f32 %v484_v48, %v487_v2  ;;  %v318_v6 = vsel %vm1159_vm14, %v316_v61, %v317_v62  ;;  %v465_v7 = vmax.f32 %v460_v51, %v463_v63 }
 0x146   : > { %v319_v8 = vrot.slane %v318_v6, 1  ;;  %v320_v9 = vrot.slane %v318_v6, 7  ;;  %v349_v10 = vsel %vm1080_vm6, %v347_v0, %v348_v1 }
 0x147   : > { %v490_v11 = vsel %vm1125_vm12, %v488_v4, %v489_v5  ;;  %v350_v15 = vmin.f32 %v346_v53, %v349_v10  ;;  %v351_v17 = vmax.f32 %v346_v53, %v349_v10  ;;  %v466_v21 = vsel %vm1159_vm14, %v464_v3, %v465_v7 }
 0x148   : > { %v491_v18 = vrot.slane %v490_v11, 4  ;;  %v321_v19 = vsel %vm1071_vm2, %v319_v8, %v320_v9  ;;  %v467_v31 = vrot.slane %v466_v21, 1  ;;  %v468_v32 = vrot.slane %v466_v21, 7 }
 0x149   : > { %v352_v20 = vsel %vm1159_vm14, %v350_v15, %v351_v17  ;;  %v322_v12 = vmin.f32 %v318_v6, %v321_v19  ;;  %v323_v28 = vmax.f32 %v318_v6, %v321_v19 }
 0x14a   : > { %v492_v22 = vmin.f32 %v490_v11, %v491_v18  ;;  %v493_v23 = vmax.f32 %v490_v11, %v491_v18  ;;  %v353_v24 = vrot.slane %v352_v20, 1  ;;  %v354_v27 = vrot.slane %v352_v20, 7 }
 0x14b   : > { %v324_v37 = vsel %vm1184_vm15, %v322_v12, %v323_v28  ;;  %v469_v42 = vsel %vm1071_vm2, %v467_v31, %v468_v32 }
 0x14c   : > { %v494_v29 = vsel %vm1140_vm13, %v492_v22, %v493_v23  ;;  %v355_v30 = vsel %vm1071_vm2, %v353_v24, %v354_v27  ;;  %v470_v48 = vmin.f32 %v466_v21, %v469_v42  ;;  %v471_v49 = vmax.f32 %v466_v21, %v469_v42 }
 0x14d   : > { %v495_v33 = vrot.slane %v494_v29, 2  ;;  %v496_v34 = vrot.slane %v494_v29, 6  ;;  %v356_v35 = vmin.f32 %v352_v20, %v355_v30  ;;  %v357_v36 = vmax.f32 %v352_v20, %v355_v30 }
 0x14e   : > { %v472_v55 = vsel %vm1184_vm15, %v470_v48, %v471_v49 }
 0x14f   : > { %v358_v38 = vsel %vm1184_vm15, %v356_v35, %v357_v36  ;;  %v497_v39 = vsel %vm1080_vm6, %v495_v33, %v496_v34 }
 0x150   : > { %v359_v25 = vsub.f32 %v324_v37, %v358_v38  ;;  %v498_v40 = vmin.f32 %v494_v29, %v497_v39  ;;  %v499_v41 = vmax.f32 %v494_v29, %v497_v39 }
 0x152   : > { %v360_v43 = vmul.f32 %v359_v25, %v359_v25  ;;  %v500_v44 = vsel %vm1159_vm14, %v498_v40, %v499_v41 }
 0x153   : > { %v501_v45 = vrot.slane %v500_v44, 1  ;;  %v502_v46 = vrot.slane %v500_v44, 7 }
 0x154   : > { %v361_v47 = vrot.slane %v360_v43, 4 }
 0x155   : > { %v503_v26 = vsel %vm1071_vm2, %v501_v45, %v502_v46 }
 0x156   : > { %v362_v50 = vadd.f32 %v361_v47, %v360_v43  ;;  %v504_v51 = vmin.f32 %v500_v44, %v503_v26  ;;  %v505_v52 = vmax.f32 %v500_v44, %v503_v26 }
 0x158   : > { %v363_v54 = vrot.slane %v362_v50, 2  ;;  %v506_v56 = vsel %vm1184_vm15, %v504_v51, %v505_v52 }
 0x159   : > { %v507_v57 = vsub.f32 %v472_v55, %v506_v56 }
 0x15a   : > { %v364_v58 = vadd.f32 %v363_v54, %v362_v50 }
 0x15b   : > { %v508_v59 = vmul.f32 %v507_v57, %v507_v57 }
 0x15c   : > { %v365_v53 = vrot.slane %v364_v58, 1 }
 0x15d   : > { %v509_v60 = vrot.slane %v508_v59, 4 }
 0x15e   : > { %v366_v16 = vadd.f32 %v365_v53, %v364_v58 }
 0x15f   : > { %v510_v61 = vadd.f32 %v509_v60, %v508_v59 }
 0x160   : > { %v367_v1 = vmul.f32 0.0009765625, %v366_v16 }
 0x161   : > { %v511_v62 = vrot.slane %v510_v61, 2 }
 0x163   : > { %v512_v63 = vadd.f32 %v511_v62, %v510_v61 }
 0x165   : > { %v513_v0 = vrot.slane %v512_v63, 1 }
 0x167   : > { %v514_v2 = vadd.f32 %v513_v0, %v512_v63 }
 0x169   : > { %v515_v3 = vmul.f32 0.0009765625, %v514_v2 }
 0x16b   : > { %v517_v4 = vsel %vm516_vm0, %v367_v1, %v515_v3 }
 0x16c   : > { %v519_v5 = vsel %vm518_vm1, %v517_v4, 0.0 }
 0x16d   : > { %520 = vst [vmem:[%s187_s9] sm:$0xff] %v519_v5 }
 0x16e   : > { %836 = shalt.err (!%p833_p5)
}
 0x16f   : > { %s837_s27 = scalar_lea.hbm %s1213_s30, 128  ;;  %s841_s14 = scalar_lea.hbm %s1253_s4, 256 }
 0x170   : > { %p838_p10 = scmp.ne.s32.totalorder %s1213_s30, %s837_s27  ;;  %p842_p11 = scmp.lt.s32.totalorder %s1213_s30, %s1253_s4 }
 0x171   : > { %p843_p12 = scmp.lt.s32.totalorder %s841_s14, %s837_s27 }
 0x172   : > { %p839_p0 = pnand %p838_p10, %p1290_p8 }
 0x173   : > { %p844_p9 = por %p843_p12, %p842_p11 }
 0x174   : > { %p840_p6 = pneg %p839_p0 }
 0x176   : > { %p845_p13 = pnand %p844_p9, %p840_p6 }
 0x178   : > { %848 = shalt.err (!%p845_p13)
}
 0x179   : > { %686 = dma.vmem_to_hbm [thread:$0]  (%p1290_p8), %s536_s10, 128, %s1213_s30, %s522_s5  }
 0x17a PF: > { %s547_s19 = sand.u32 1, %s881_s0   ;;  %p1291_p2 = scmp.ne.s32.totalorder %s1260_s28, 0 }
 0x17b   : > { %p1292_p3 = scmp.ge.s32.totalorder %s893_s24, 2  ;;  %s548_s20 = scalar_lea.sflag [#allocation7], %s547_s19 }
 0x17d   : > { %p697_p1 = pnand %p1292_p3, %p1291_p2 }
 0x17f   : > { %p698_p7 = pneg %p697_p1 }
 0x181   : > { %876 = dma.done.wait (%p698_p7), %s548_s20, 128  }
 0x182   : > { %878 = vsyncadd (%p698_p7), %s548_s20, 4294967168  ;;  %p26_p4 = scmp.ge.s32.totalorder %s991_s7, 4   ;;  %s1293_s0 = smov %s885_s1 }
 0x183   : > { %s1294_s1 = smov %s889_s23  ;;  %s1295_s23 = smov %s1008_s15 }
 0x184   : > { %s1296_s24 = smov %s991_s7  ;;  %28 = sbr.rel (!%p26_p4) target bundleno = 22 (0x16), region = 83 }
 0x189   :  { %553 = vsyncpa [#allocation6], 1 }
 0x18a   :  { %555 = vsyncpa [#allocation6 + $0x1], 1 }
 0x18b   :  { %556 = vsyncpa [#allocation9], 1 }
 0x18c   :  { %558 = vsyncpa [#allocation9 + $0x1], 1 }
 0x18d   :  { %559 = vsyncpa [#allocation7], 1 }
 0x18e   :  { %561 = vsyncpa [#allocation7 + $0x1], 1 }

</bundles_post_ra>
